<compile_context>
chip_gen: v7x
topology: tpu7x:2x2x1
jax: 0.10.0
libtpu: 0.0.40
codegen_flags: <defaults>
</compile_context>

<pallas_src>
import functools

import jax
import jax.numpy as jnp
from jax.experimental import pallas as pl
from jax.experimental.pallas import tpu as pltpu

BN_EPS = 1e-5


# ---------------------------------------------------------------------------
# Kernel
# ---------------------------------------------------------------------------
def mlp_kernel(x_ref, w_ref, v_ref, o_ref, *, n):
    """Whole MLP in one invocation.

    x_ref : (8, N_pad)   input, batch on lanes
    w_ref : (40, 16)     packed weights, (out, in) blocks row-stacked:
                         rows 0:16  -> W1 (16, 8)
                         rows 16:24 -> W2 (8, 16)
                         rows 24:28 -> W3 (4, 8)
                         row  32    -> W4 (1, 4)
    v_ref : (16, 10)     packed per-feature vectors as columns:
                         [b1, g1, be1, b2, g2, be2, b3, g3, be3, b4]
    o_ref : (1, N_pad)   lane-dense output
    n     : true (unpadded) batch size, static.
    """
    x = x_ref[...]                       # (8, N_pad)
    W = w_ref[...]                       # (40, 16)
    V = v_ref[...]                       # (16, 10)

    n_pad = x.shape[1]
    inv_n = jnp.float32(1.0 / n)

    if n == n_pad:
        # No padded lanes -> skip the mask multiplies entirely (trace-time).
        def masked_sum(v):
            return jnp.sum(v, axis=1, keepdims=True)
    else:
        lane = jax.lax.broadcasted_iota(jnp.int32, (1, n_pad), 1)
        maskf = (lane < n).astype(jnp.float32)      # (1, N_pad)

        def masked_sum(v):
            return jnp.sum(v * maskf, axis=1, keepdims=True)

    def swish(v):
        return v * jax.nn.sigmoid(v)

    def batchnorm(v, gamma, beta):
        # Single-pass batch stats over the lane (batch) axis, padded lanes
        # masked out.  var = E[v^2] - mu^2 (verified within tolerance).
        mu = masked_sum(v) * inv_n                     # (F, 1)
        ex2 = masked_sum(v * v) * inv_n                # (F, 1)
        var = ex2 - mu * mu
        scale = jax.lax.rsqrt(var + BN_EPS) * gamma    # (F, 1)
        return (v - mu) * scale + beta

    f32 = jnp.float32

    # fc1 -> swish -> bn1
    h = swish(jnp.dot(W[0:16, 0:8], x, preferred_element_type=f32)
              + V[0:16, 0:1])                                    # (16, N_pad)
    h = batchnorm(h, V[0:16, 1:2], V[0:16, 2:3])

    # fc2 -> swish -> bn2
    h = swish(jnp.dot(W[16:24, 0:16], h, preferred_element_type=f32)
              + V[0:8, 3:4])                                     # (8, N_pad)
    h = batchnorm(h, V[0:8, 4:5], V[0:8, 5:6])

    # fc3 -> swish -> bn3
    h = swish(jnp.dot(W[24:28, 0:8], h, preferred_element_type=f32)
              + V[0:4, 6:7])                                     # (4, N_pad)
    h = batchnorm(h, V[0:4, 7:8], V[0:4, 8:9])

    # fc4 -> sigmoid  (lane-dense (1, N_pad) store)
    y = jax.nn.sigmoid(jnp.dot(W[32:33, 0:4], h, preferred_element_type=f32)
                       + V[0:1, 9:10])                           # (1, N_pad)
    o_ref[...] = y.astype(o_ref.dtype)


# ---------------------------------------------------------------------------
# Wrapper
# ---------------------------------------------------------------------------
@jax.jit
def network_forward(x, w_slab, v_slab):
    """x: (N, 8) f32 -> (N, 1) f32."""
    n = x.shape[0]
    n_pad = max(128, ((n + 127) // 128) * 128)

    # One transpose + zero-pad in the wrapper: batch onto the lane axis.
    xt = jnp.zeros((8, n_pad), jnp.float32).at[:, :n].set(x.T)

    vmem_spec = pl.BlockSpec(memory_space=pltpu.MemorySpace.VMEM)
    out = pl.pallas_call(
        functools.partial(mlp_kernel, n=n),
        out_shape=jax.ShapeDtypeStruct((1, n_pad), jnp.float32),
        in_specs=[vmem_spec, vmem_spec, vmem_spec],
        out_specs=vmem_spec,
    )(xt, w_slab, v_slab)

    return out[0, :n].reshape(n, 1)


# ---------------------------------------------------------------------------
# Parameters (deterministic, PyTorch-compatible shapes) + packing
# ---------------------------------------------------------------------------
def init_params(key):
    """Linear weights in PyTorch layout (out, in); BN gamma=1, beta=0."""
    sizes = [(8, 16), (16, 8), (8, 4), (4, 1)]
    keys = jax.random.split(key, 2 * len(sizes))
    p = {}
    for i, (fin, fout) in enumerate(sizes):
        bound = 1.0 / (fin ** 0.5)
        p[f"w{i+1}"] = jax.random.uniform(
            keys[2 * i], (fout, fin), jnp.float32, -bound, bound)
        p[f"b{i+1}"] = jax.random.uniform(
            keys[2 * i + 1], (fout,), jnp.float32, -bound, bound)
        if i < 3:
            p[f"g{i+1}"] = jnp.ones((fout,), jnp.float32)
            p[f"be{i+1}"] = jnp.zeros((fout,), jnp.float32)
    return p


def pack_params(p):
    """Pack the 14 parameter tensors into two small VMEM slabs."""
    w_slab = jnp.zeros((40, 16), jnp.float32)
    w_slab = w_slab.at[0:16, 0:8].set(p["w1"])
    w_slab = w_slab.at[16:24, 0:16].set(p["w2"])
    w_slab = w_slab.at[24:28, 0:8].set(p["w3"])
    w_slab = w_slab.at[32:33, 0:4].set(p["w4"])

    v_slab = jnp.zeros((16, 10), jnp.float32)
    v_slab = v_slab.at[0:16, 0].set(p["b1"])
    v_slab = v_slab.at[0:16, 1].set(p["g1"])
    v_slab = v_slab.at[0:16, 2].set(p["be1"])
    v_slab = v_slab.at[0:8, 3].set(p["b2"])
    v_slab = v_slab.at[0:8, 4].set(p["g2"])
    v_slab = v_slab.at[0:8, 5].set(p["be2"])
    v_slab = v_slab.at[0:4, 6].set(p["b3"])
    v_slab = v_slab.at[0:4, 7].set(p["g3"])
    v_slab = v_slab.at[0:4, 8].set(p["be3"])
    v_slab = v_slab.at[0:1, 9].set(p["b4"])
    return w_slab, v_slab


# ---------------------------------------------------------------------------
# Pure-JAX reference (mirrors the PyTorch forward, (N, F) orientation)
# ---------------------------------------------------------------------------
def reference_forward(x, p):
    def swish(v):
        return v * jax.nn.sigmoid(v)

    def bn(v, g, b):
        mu = jnp.mean(v, axis=0, keepdims=True)
        var = jnp.mean((v - mu) ** 2, axis=0, keepdims=True)
        return (v - mu) * jax.lax.rsqrt(var + BN_EPS) * g + b

    h = swish(x @ p["w1"].T + p["b1"])
    h = bn(h, p["g1"], p["be1"])
    h = swish(h @ p["w2"].T + p["b2"])
    h = bn(h, p["g2"], p["be2"])
    h = swish(h @ p["w3"].T + p["b3"])
    h = bn(h, p["g3"], p["be3"])
    return jax.nn.sigmoid(h @ p["w4"].T + p["b4"])


# ---------------------------------------------------------------------------
if __name__ == "__main__":
    key = jax.random.PRNGKey(0)
    k_x, k_p = jax.random.split(key)

    batch = 200  # not a multiple of 128 -> exercises lane padding + masked BN
    x = jax.random.normal(k_x, (batch, 8), dtype=jnp.float32)

    params = init_params(k_p)
    w_slab, v_slab = pack_params(params)

    out = network_forward(x, w_slab, v_slab)
    out = jax.block_until_ready(out)

    ref = reference_forward(x, params)
    assert out.shape == (batch, 1)
    max_diff = float(jnp.max(jnp.abs(out - ref)))
    assert jnp.allclose(out, ref, atol=5e-5, rtol=1e-4), f"mismatch: {max_diff}"

    print("KERNEL_OK")
</pallas_src>

<mosaic_0001>
module attributes {stable_mosaic.version = 11 : i64} {
  func.func @mlp_kernel(%arg0: memref<8x256xf32, #tpu.memory_space<vmem>>, %arg1: memref<40x16xf32, #tpu.memory_space<vmem>>, %arg2: memref<16x10xf32, #tpu.memory_space<vmem>>, %arg3: memref<1x256xf32, #tpu.memory_space<vmem>>) attributes {dimension_semantics = [], scalar_prefetch = 0 : i64, scratch_operands = 0 : i64, tpu.core_type = #tpu.core_type<tc>} {
    %c0 = arith.constant 0 : index
    %c0_0 = arith.constant 0 : index
    %0 = vector.load %arg0[%c0, %c0_0] : memref<8x256xf32, #tpu.memory_space<vmem>>, vector<8x256xf32>
    %c0_1 = arith.constant 0 : index
    %c0_2 = arith.constant 0 : index
    %1 = vector.load %arg1[%c0_1, %c0_2] : memref<40x16xf32, #tpu.memory_space<vmem>>, vector<40x16xf32>
    %c0_3 = arith.constant 0 : index
    %c0_4 = arith.constant 0 : index
    %2 = vector.load %arg2[%c0_3, %c0_4] : memref<16x10xf32, #tpu.memory_space<vmem>>, vector<16x10xf32>
    %3 = tpu.iota {dimensions = array<i32: 1>} : vector<1x256xi32>
    %c200_i32 = arith.constant 200 : i32
    %4 = vector.broadcast %c200_i32 : i32 to vector<1x256xi32>
    %5 = arith.cmpi slt, %3, %4 : vector<1x256xi32>
    %6 = arith.extui %5 : vector<1x256xi1> to vector<1x256xi32>
    %7 = arith.sitofp %6 : vector<1x256xi32> to vector<1x256xf32>
    %8 = vector.extract_strided_slice %1 {offsets = [0, 0], sizes = [16, 8], strides = [1, 1]} : vector<40x16xf32> to vector<16x8xf32>
    %cst = arith.constant dense<0.000000e+00> : vector<16x256xf32>
    %9 = tpu.matmul %8, %0, %cst {dimension_numbers = #tpu.dot_dimension_numbers<[1], [0], [0], [1], [0, 0, 1, 1], [], []>} : vector<16x8xf32>, vector<8x256xf32>, vector<16x256xf32> -> vector<16x256xf32>
    %10 = vector.extract_strided_slice %2 {offsets = [0, 0], sizes = [16, 1], strides = [1, 1]} : vector<16x10xf32> to vector<16x1xf32>
    %11 = vector.broadcast %10 : vector<16x1xf32> to vector<16x256xf32>
    %12 = arith.addf %9, %11 : vector<16x256xf32>
    %13 = arith.negf %12 : vector<16x256xf32>
    %14 = math.exp %13 : vector<16x256xf32>
    %cst_5 = arith.constant 1.000000e+00 : f32
    %15 = vector.broadcast %cst_5 : f32 to vector<16x256xf32>
    %16 = arith.addf %15, %14 : vector<16x256xf32>
    %17 = arith.divf %15, %16 : vector<16x256xf32>
    %18 = arith.mulf %12, %17 : vector<16x256xf32>
    %19 = vector.extract_strided_slice %2 {offsets = [0, 1], sizes = [16, 1], strides = [1, 1]} : vector<16x10xf32> to vector<16x1xf32>
    %20 = vector.extract_strided_slice %2 {offsets = [0, 2], sizes = [16, 1], strides = [1, 1]} : vector<16x10xf32> to vector<16x1xf32>
    %21 = vector.broadcast %7 : vector<1x256xf32> to vector<16x256xf32>
    %22 = arith.mulf %18, %21 : vector<16x256xf32>
    %cst_6 = arith.constant dense<0.000000e+00> : vector<16xf32>
    %23 = vector.multi_reduction <add>, %22, %cst_6 [1] : vector<16x256xf32> to vector<16xf32>
    %24 = vector.shape_cast %23 : vector<16xf32> to vector<16x1xf32>
    %cst_7 = arith.constant 5.000000e-03 : f32
    %25 = vector.broadcast %cst_7 : f32 to vector<16x1xf32>
    %26 = arith.mulf %24, %25 : vector<16x1xf32>
    %27 = arith.mulf %18, %18 : vector<16x256xf32>
    %28 = vector.broadcast %7 : vector<1x256xf32> to vector<16x256xf32>
    %29 = arith.mulf %27, %28 : vector<16x256xf32>
    %cst_8 = arith.constant dense<0.000000e+00> : vector<16xf32>
    %30 = vector.multi_reduction <add>, %29, %cst_8 [1] : vector<16x256xf32> to vector<16xf32>
    %31 = vector.shape_cast %30 : vector<16xf32> to vector<16x1xf32>
    %cst_9 = arith.constant 5.000000e-03 : f32
    %32 = vector.broadcast %cst_9 : f32 to vector<16x1xf32>
    %33 = arith.mulf %31, %32 : vector<16x1xf32>
    %34 = arith.mulf %26, %26 : vector<16x1xf32>
    %35 = arith.subf %33, %34 : vector<16x1xf32>
    %cst_10 = arith.constant 9.99999974E-6 : f32
    %36 = vector.broadcast %cst_10 : f32 to vector<16x1xf32>
    %37 = arith.addf %35, %36 : vector<16x1xf32>
    %38 = math.rsqrt %37 : vector<16x1xf32>
    %39 = arith.mulf %38, %19 : vector<16x1xf32>
    %40 = vector.broadcast %26 : vector<16x1xf32> to vector<16x256xf32>
    %41 = arith.subf %18, %40 : vector<16x256xf32>
    %42 = vector.broadcast %39 : vector<16x1xf32> to vector<16x256xf32>
    %43 = arith.mulf %41, %42 : vector<16x256xf32>
    %44 = vector.broadcast %20 : vector<16x1xf32> to vector<16x256xf32>
    %45 = arith.addf %43, %44 : vector<16x256xf32>
    %46 = vector.extract_strided_slice %1 {offsets = [16, 0], sizes = [8, 16], strides = [1, 1]} : vector<40x16xf32> to vector<8x16xf32>
    %cst_11 = arith.constant dense<0.000000e+00> : vector<8x256xf32>
    %47 = tpu.matmul %46, %45, %cst_11 {dimension_numbers = #tpu.dot_dimension_numbers<[1], [0], [0], [1], [0, 0, 1, 1], [], []>} : vector<8x16xf32>, vector<16x256xf32>, vector<8x256xf32> -> vector<8x256xf32>
    %48 = vector.extract_strided_slice %2 {offsets = [0, 3], sizes = [8, 1], strides = [1, 1]} : vector<16x10xf32> to vector<8x1xf32>
    %49 = vector.broadcast %48 : vector<8x1xf32> to vector<8x256xf32>
    %50 = arith.addf %47, %49 : vector<8x256xf32>
    %51 = arith.negf %50 : vector<8x256xf32>
    %52 = math.exp %51 : vector<8x256xf32>
    %cst_12 = arith.constant 1.000000e+00 : f32
    %53 = vector.broadcast %cst_12 : f32 to vector<8x256xf32>
    %54 = arith.addf %53, %52 : vector<8x256xf32>
    %55 = arith.divf %53, %54 : vector<8x256xf32>
    %56 = arith.mulf %50, %55 : vector<8x256xf32>
    %57 = vector.extract_strided_slice %2 {offsets = [0, 4], sizes = [8, 1], strides = [1, 1]} : vector<16x10xf32> to vector<8x1xf32>
    %58 = vector.extract_strided_slice %2 {offsets = [0, 5], sizes = [8, 1], strides = [1, 1]} : vector<16x10xf32> to vector<8x1xf32>
    %59 = vector.broadcast %7 : vector<1x256xf32> to vector<8x256xf32>
    %60 = arith.mulf %56, %59 : vector<8x256xf32>
    %cst_13 = arith.constant dense<0.000000e+00> : vector<8xf32>
    %61 = vector.multi_reduction <add>, %60, %cst_13 [1] : vector<8x256xf32> to vector<8xf32>
    %62 = vector.shape_cast %61 : vector<8xf32> to vector<8x1xf32>
    %cst_14 = arith.constant 5.000000e-03 : f32
    %63 = vector.broadcast %cst_14 : f32 to vector<8x1xf32>
    %64 = arith.mulf %62, %63 : vector<8x1xf32>
    %65 = arith.mulf %56, %56 : vector<8x256xf32>
    %66 = vector.broadcast %7 : vector<1x256xf32> to vector<8x256xf32>
    %67 = arith.mulf %65, %66 : vector<8x256xf32>
    %cst_15 = arith.constant dense<0.000000e+00> : vector<8xf32>
    %68 = vector.multi_reduction <add>, %67, %cst_15 [1] : vector<8x256xf32> to vector<8xf32>
    %69 = vector.shape_cast %68 : vector<8xf32> to vector<8x1xf32>
    %cst_16 = arith.constant 5.000000e-03 : f32
    %70 = vector.broadcast %cst_16 : f32 to vector<8x1xf32>
    %71 = arith.mulf %69, %70 : vector<8x1xf32>
    %72 = arith.mulf %64, %64 : vector<8x1xf32>
    %73 = arith.subf %71, %72 : vector<8x1xf32>
    %cst_17 = arith.constant 9.99999974E-6 : f32
    %74 = vector.broadcast %cst_17 : f32 to vector<8x1xf32>
    %75 = arith.addf %73, %74 : vector<8x1xf32>
    %76 = math.rsqrt %75 : vector<8x1xf32>
    %77 = arith.mulf %76, %57 : vector<8x1xf32>
    %78 = vector.broadcast %64 : vector<8x1xf32> to vector<8x256xf32>
    %79 = arith.subf %56, %78 : vector<8x256xf32>
    %80 = vector.broadcast %77 : vector<8x1xf32> to vector<8x256xf32>
    %81 = arith.mulf %79, %80 : vector<8x256xf32>
    %82 = vector.broadcast %58 : vector<8x1xf32> to vector<8x256xf32>
    %83 = arith.addf %81, %82 : vector<8x256xf32>
    %84 = vector.extract_strided_slice %1 {offsets = [24, 0], sizes = [4, 8], strides = [1, 1]} : vector<40x16xf32> to vector<4x8xf32>
    %cst_18 = arith.constant dense<0.000000e+00> : vector<4x256xf32>
    %85 = tpu.matmul %84, %83, %cst_18 {dimension_numbers = #tpu.dot_dimension_numbers<[1], [0], [0], [1], [0, 0, 1, 1], [], []>} : vector<4x8xf32>, vector<8x256xf32>, vector<4x256xf32> -> vector<4x256xf32>
    %86 = vector.extract_strided_slice %2 {offsets = [0, 6], sizes = [4, 1], strides = [1, 1]} : vector<16x10xf32> to vector<4x1xf32>
    %87 = vector.broadcast %86 : vector<4x1xf32> to vector<4x256xf32>
    %88 = arith.addf %85, %87 : vector<4x256xf32>
    %89 = arith.negf %88 : vector<4x256xf32>
    %90 = math.exp %89 : vector<4x256xf32>
    %cst_19 = arith.constant 1.000000e+00 : f32
    %91 = vector.broadcast %cst_19 : f32 to vector<4x256xf32>
    %92 = arith.addf %91, %90 : vector<4x256xf32>
    %93 = arith.divf %91, %92 : vector<4x256xf32>
    %94 = arith.mulf %88, %93 : vector<4x256xf32>
    %95 = vector.extract_strided_slice %2 {offsets = [0, 7], sizes = [4, 1], strides = [1, 1]} : vector<16x10xf32> to vector<4x1xf32>
    %96 = vector.extract_strided_slice %2 {offsets = [0, 8], sizes = [4, 1], strides = [1, 1]} : vector<16x10xf32> to vector<4x1xf32>
    %97 = vector.broadcast %7 : vector<1x256xf32> to vector<4x256xf32>
    %98 = arith.mulf %94, %97 : vector<4x256xf32>
    %cst_20 = arith.constant dense<0.000000e+00> : vector<4xf32>
    %99 = vector.multi_reduction <add>, %98, %cst_20 [1] : vector<4x256xf32> to vector<4xf32>
    %100 = vector.shape_cast %99 : vector<4xf32> to vector<4x1xf32>
    %cst_21 = arith.constant 5.000000e-03 : f32
    %101 = vector.broadcast %cst_21 : f32 to vector<4x1xf32>
    %102 = arith.mulf %100, %101 : vector<4x1xf32>
    %103 = arith.mulf %94, %94 : vector<4x256xf32>
    %104 = vector.broadcast %7 : vector<1x256xf32> to vector<4x256xf32>
    %105 = arith.mulf %103, %104 : vector<4x256xf32>
    %cst_22 = arith.constant dense<0.000000e+00> : vector<4xf32>
    %106 = vector.multi_reduction <add>, %105, %cst_22 [1] : vector<4x256xf32> to vector<4xf32>
    %107 = vector.shape_cast %106 : vector<4xf32> to vector<4x1xf32>
    %cst_23 = arith.constant 5.000000e-03 : f32
    %108 = vector.broadcast %cst_23 : f32 to vector<4x1xf32>
    %109 = arith.mulf %107, %108 : vector<4x1xf32>
    %110 = arith.mulf %102, %102 : vector<4x1xf32>
    %111 = arith.subf %109, %110 : vector<4x1xf32>
    %cst_24 = arith.constant 9.99999974E-6 : f32
    %112 = vector.broadcast %cst_24 : f32 to vector<4x1xf32>
    %113 = arith.addf %111, %112 : vector<4x1xf32>
    %114 = math.rsqrt %113 : vector<4x1xf32>
    %115 = arith.mulf %114, %95 : vector<4x1xf32>
    %116 = vector.broadcast %102 : vector<4x1xf32> to vector<4x256xf32>
    %117 = arith.subf %94, %116 : vector<4x256xf32>
    %118 = vector.broadcast %115 : vector<4x1xf32> to vector<4x256xf32>
    %119 = arith.mulf %117, %118 : vector<4x256xf32>
    %120 = vector.broadcast %96 : vector<4x1xf32> to vector<4x256xf32>
    %121 = arith.addf %119, %120 : vector<4x256xf32>
    %122 = vector.extract_strided_slice %1 {offsets = [32, 0], sizes = [1, 4], strides = [1, 1]} : vector<40x16xf32> to vector<1x4xf32>
    %cst_25 = arith.constant dense<0.000000e+00> : vector<1x256xf32>
    %123 = tpu.matmul %122, %121, %cst_25 {dimension_numbers = #tpu.dot_dimension_numbers<[1], [0], [0], [1], [0, 0, 1, 1], [], []>} : vector<1x4xf32>, vector<4x256xf32>, vector<1x256xf32> -> vector<1x256xf32>
    %124 = vector.extract_strided_slice %2 {offsets = [0, 9], sizes = [1, 1], strides = [1, 1]} : vector<16x10xf32> to vector<1x1xf32>
    %125 = vector.broadcast %124 : vector<1x1xf32> to vector<1x256xf32>
    %126 = arith.addf %123, %125 : vector<1x256xf32>
    %127 = arith.negf %126 : vector<1x256xf32>
    %128 = math.exp %127 : vector<1x256xf32>
    %cst_26 = arith.constant 1.000000e+00 : f32
    %129 = vector.broadcast %cst_26 : f32 to vector<1x256xf32>
    %130 = arith.addf %129, %128 : vector<1x256xf32>
    %131 = arith.divf %129, %130 : vector<1x256xf32>
    %c0_27 = arith.constant 0 : index
    %c0_28 = arith.constant 0 : index
    %132 = vector.load %arg3[%c0_27, %c0_28] : memref<1x256xf32, #tpu.memory_space<vmem>>, vector<1x256xf32>
    tpu.vector_store %arg3[%c0_27, %c0_28], %131 {strides = array<i32>} : memref<1x256xf32, #tpu.memory_space<vmem>>, vector<1x256xf32>,
    return
  }
}

</mosaic_0001>

<bundles_post_ra>
// kernel: network_forward.1
= control target key start
LH: loop header
LB: loop body
LE: loop exit
PB: predicated region body
PF: predicated region fallthrough
CT: control target
= control target key end

     0   :  { %v698_v2 = vmov 0.0   ;;  %vm42_vm0 = vcmask 64512   ;;  %v699_v4 = vmov 0   ;;  %v23_v22 = vlaneseq  ;;  %s805_s0 = inlined_call_operand.vmem [shape: f32[8,256], index: 0, kind: input, shape index: {}]   ;;  %s806_s1 = inlined_call_operand.vmem [shape: f32[40,16], index: 1, kind: input, shape index: {}]   ;;  %s807_s2 = inlined_call_operand.vmem [shape: f32[16,10], index: 2, kind: input, shape index: {}]   ;;  %s808_s3 = inlined_call_operand.vmem [shape: f32[1,256], index: 3, kind: output, shape index: {}]  }
   0x1   :  { %v15_v0 = vld [vmem:[%s805_s0 + $0x8] sm:$0xff]  ;;  %v14_v1 = vld [vmem:[%s805_s0] sm:$0xff]  ;;  %113 = vmatprep.mubr.f32.mxu0 %v698_v2  ;;  %638 = vset.pattern.permute.xlu0 %v699_v4  ;;  %v700_v54 = vmov 2   ;;  %v701_v55 = vmov 1   ;;  %vm226_vm2 = vcmask 130048   ;;  %vm443_vm3 = vcmask 1043456  }
   0x2   :  { %v16_v3 = vld [vmem:[%s806_s1] sm:$0xff]  ;;  %49 = vmatprep.subr.mxu0 %v15_v0  ;;  %294 = vmatprep.mubr.f32.mxu1 %v698_v2  ;;  %v751_v6 = vld [vmem:[%s807_s2 + $0x8] sm:$0xff]  ;;  %v24_v27 = vand.u32 127, %v23_v22  ;;  %vm484_vm4 = vcmask 31744   ;;  %vm597_vm5 = vcmp.lt.s32.totalorder %v23_v22, 256 }
   0x3   :  { %v743_v5 = vld [vmem:[%s807_s2] sm:$0xff]  ;;  %50 = vmatpush1.msra.mxu0 %v14_v1  ;;  %v17_v7 = vld [vmem:[%s806_s1 + $0x8] sm:$0xff]  ;;  %639 = vset.pattern.permute.xlu1 %v700_v54 }
   0x4   :  { %34 = vperm.xlu0 %638, %v743_v5   ;;  %605 = vmatmul.mubr.msk.f32.vlgmr.msra.gmra.mrb[0].mxu0 %vm42_vm0, %v16_v3  ;;  %v25_v32 = vadd.s32 128, %v24_v27 }
   0x5   :  { %119 = vmatprep.mubr.f32.mxu0 %v698_v2 }
   0x6   :  { %vm27_vm1 = vcmp.lt.s32.totalorder %v25_v32, 200  ;;  %v18_v32 = vld [vmem:[%s806_s1 + $0x10] sm:$0xff] }
   0x7   :  { %v762_v35 = vsel %vm27_vm1, 1.0, %v698_v2 }
   0x8   :  { %39 = vperm.xlu0 %638, %v751_v6   ;;  %606 = vmatmul.mubr.msk.f32.gmra.mrb[2].mxu0 %vm42_vm0, %v17_v7 }
   0x9   :  { %558 = vmatprep.mubr.f32.mxu0 %v698_v2 }
  0x83   :  { %v35_v8 = vpop.permute.xlu0 %34 }
  0x87   :  { %v40_v14 = vpop.permute.xlu0 %39 }
  0xd7   :  { %v115_v9 = vpop.f32.mrb[0].mxu0 }
  0xd8   :  { %v116_v10 = vadd.f32 %v115_v9, %v35_v8  ;;  %v117_v11 = vpop.f32.mrb[1].mxu0 }
  0xd9   :  { %v118_v12 = vadd.f32 %v117_v11, %v35_v8 }
  0xda   :  { %v607_v13 = vmul.f32 -1.442695, %v116_v10 }
  0xdb   :  { %v608_v15 = vmul.f32 -1.442695, %v118_v12  ;;  %v121_v16 = vpop.f32.mrb[2].mxu0 }
  0xdc   :  { %650 = vpow2.f32 %v607_v13  ;;  %v122_v17 = vadd.f32 %v121_v16, %v40_v14  ;;  %v123_v18 = vpop.f32.mrb[3].mxu0  ;;  %v702_v13 = vmov 3  }
  0xdd   :  { %652 = vpow2.f32 %v608_v15  ;;  %v124_v19 = vadd.f32 %v123_v18, %v40_v14  ;;  %642 = vset.pattern.permute.xlu0 %v702_v13  ;;  %v19_v13 = vld [vmem:[%s806_s1 + $0x18] sm:$0xff] }
  0xde   :  { %v609_v20 = vmul.f32 -1.442695, %v122_v17 }
  0xdf   :  { %v610_v21 = vmul.f32 -1.442695, %v124_v19 }
  0xe0   :  { %654 = vpow2.f32 %v609_v20 }
  0xe1   :  { %656 = vpow2.f32 %v610_v21 }
  0xe6   :  { %v651_v23 = vpop.eup %650 }
  0xe7   :  { %v653_v24 = vpop.eup %652  ;;  %v138_v25 = vadd.f32 1.0, %v651_v23 }
  0xe8   :  { %v139_v26 = vadd.f32 1.0, %v653_v24 }
  0xe9   :  { %658 = vrcp.f32 %v138_v25 }
  0xea   :  { %v655_v28 = vpop.eup %654  ;;  %660 = vrcp.f32 %v139_v26 }
  0xeb   :  { %v657_v29 = vpop.eup %656  ;;  %v140_v30 = vadd.f32 1.0, %v655_v28 }
  0xec   :  { %v141_v31 = vadd.f32 1.0, %v657_v29 }
  0xed   :  { %662 = vrcp.f32 %v140_v30 }
  0xee   :  { %664 = vrcp.f32 %v141_v31 }
  0xf3   :  { %v659_v33 = vpop.eup %658 }
  0xf4   :  { %v661_v34 = vpop.eup %660  ;;  %v150_v36 = vmul.f32 %v659_v33, %v116_v10 }
  0xf5   :  { %v151_v37 = vmul.f32 %v661_v34, %v118_v12 }
  0xf6   :  { %v166_v44 = vmul.f32 %v150_v36, %v150_v36 }
  0xf7   :  { %v663_v38 = vpop.eup %662  ;;  %v155_v39 = vmul.f32 %v762_v35, %v151_v37  ;;  %v167_v40 = vmul.f32 %v151_v37, %v151_v37 }
  0xf8   :  { %v665_v41 = vpop.eup %664  ;;  %v152_v46 = vmul.f32 %v663_v38, %v122_v17 }
  0xf9   :  { %v153_v42 = vmul.f32 %v665_v41, %v124_v19  ;;  %v158_v43 = vadd.f32 %v155_v39, %v150_v36  ;;  %v171_v45 = vmul.f32 %v762_v35, %v167_v40 }
  0xfa   :  { %v168_v52 = vmul.f32 %v152_v46, %v152_v46 }
  0xfb   :  { %159 = vadd.xlane.f32.xlu1 %v158_v43  ;;  %v174_v47 = vadd.f32 %v171_v45, %v166_v44  ;;  %v157_v48 = vmul.f32 %v762_v35, %v153_v42  ;;  %v169_v49 = vmul.f32 %v153_v42, %v153_v42 }
  0xfd   :  { %175 = vadd.xlane.f32.xlu0 %v174_v47  ;;  %v161_v50 = vadd.f32 %v157_v48, %v152_v46  ;;  %v173_v51 = vmul.f32 %v762_v35, %v169_v49 }
  0xff   :  { %162 = vadd.xlane.f32.xlu1 %v161_v50  ;;  %v177_v53 = vadd.f32 %v173_v51, %v168_v52 }
 0x103   :  { %178 = vadd.xlane.f32.xlu1 %v177_v53 }
 0x113   :  { %223 = vperm.xlu0 %642, %v743_v5  }
 0x114   :  { %211 = vperm.xlu1 %639, %v743_v5  }
 0x118   :  { %640 = vset.pattern.permute.xlu1 %v701_v55  ;;  %v704_v55 = vmov 5  }
 0x119   :  { %644 = vset.pattern.permute.xlu0 %v704_v55 }
 0x11a   :  { %344 = vperm.xlu0 %644, %v743_v5  }
 0x188   :  { %v160_v56 = vpop.xlane.xlu1 %159 }
 0x189   :  { %v164_v57 = vmul.f32 0.005, %v160_v56 }
 0x18a   :  { %v176_v58 = vpop.xlane.xlu0 %175 }
 0x18b   :  { %v180_v59 = vmul.f32 0.005, %v176_v58  ;;  %v182_v60 = vmul.f32 %v164_v57, %v164_v57  ;;  %v192_v16 = vsub.f32 %v150_v36, %v164_v57  ;;  %v193_v17 = vsub.f32 %v151_v37, %v164_v57 }
 0x18c   :  { %v163_v61 = vpop.xlane.xlu1 %162 }
 0x18d   :  { %v184_v62 = vsub.f32 %v180_v59, %v182_v60  ;;  %v165_v63 = vmul.f32 0.005, %v163_v61 }
 0x18f   :  { %v186_v0 = vadd.f32 1e-05, %v184_v62  ;;  %v183_v3 = vmul.f32 %v165_v63, %v165_v63  ;;  %v194_v21 = vsub.f32 %v152_v46, %v165_v63  ;;  %v195_v23 = vsub.f32 %v153_v42, %v165_v63 }
 0x190   :  { %v179_v1 = vpop.xlane.xlu1 %178 }
 0x191   :  { %666 = vrsqrt.f32 %v186_v0  ;;  %v181_v4 = vmul.f32 0.005, %v179_v1  ;;  %v705_v1 = vmov 6  }
 0x192   :  { %v224_v33 = vpop.permute.xlu0 %223  ;;  %645 = vset.pattern.permute.xlu0 %v705_v1 }
 0x193   :  { %v185_v7 = vsub.f32 %v181_v4, %v183_v3  ;;  %350 = vperm.xlu0 %645, %v743_v5  }
 0x194   :  { %v212_v14 = vpop.permute.xlu1 %211 }
 0x195   :  { %v187_v8 = vadd.f32 1e-05, %v185_v7 }
 0x197   :  { %668 = vrsqrt.f32 %v187_v8 }
 0x199   :  { %v345_v8 = vpop.permute.xlu0 %344 }
 0x19b   :  { %v667_v9 = vpop.eup %666 }
 0x19c   :  { %v190_v10 = vmul.f32 %v667_v9, %v743_v5 }
 0x19e   :  { %198 = vperm.xlu1 %640, %v190_v10  }
 0x1a1   :  { %v669_v11 = vpop.eup %668 }
 0x1a2   :  { %v191_v12 = vmul.f32 %v669_v11, %v751_v6 }
 0x1a4   :  { %203 = vperm.xlu1 %640, %v191_v12  }
 0x1a8   :  { %641 = vset.pattern.permute.xlu1 %v700_v54  ;;  %v703_v54 = vmov 4  }
 0x1a9   :  { %215 = vperm.xlu1 %641, %v751_v6  }
 0x1ad   :  { %643 = vset.pattern.permute.xlu1 %v703_v54 }
 0x21d   :  { %v199_v15 = vpop.permute.xlu1 %198 }
 0x21e   :  { %v206_v19 = vmul.f32 %v199_v15, %v192_v16  ;;  %v207_v20 = vmul.f32 %v199_v15, %v193_v17 }
 0x220   :  { %v219_v29 = vadd.f32 %v212_v14, %v207_v20  ;;  %v218_v6 = vadd.f32 %v212_v14, %v206_v19  ;;  %v351_v14 = vpop.permute.xlu0 %350 }
 0x223   :  { %v204_v18 = vpop.permute.xlu1 %203 }
 0x224   :  { %v208_v24 = vmul.f32 %v204_v18, %v194_v21  ;;  %v209_v25 = vmul.f32 %v204_v18, %v195_v23 }
 0x228   :  { %v216_v26 = vpop.permute.xlu1 %215 }
 0x229   :  { %v220_v27 = vadd.f32 %v216_v26, %v208_v24  ;;  %v221_v28 = vadd.f32 %v216_v26, %v209_v25 }
 0x22b   :  { %v622_v30 = vpack.c.bf16 %v221_v28, %v219_v29  ;;  %v624_v31 = vpack.c.bf16 %v220_v27, %v218_v6 }
 0x22d   :  { %623 = vmatprep.subr.bf16.mxu1 %v622_v30 }
 0x22e   :  { %625 = vmatpush1.bf16.msra.mxu1 %v624_v31 }
 0x231   :  { %611 = vmatmul.mubr.msk.f32.vlgmr.msra.gmra.mrb[0].mxu1 %vm226_vm2, %v18_v32 }
 0x232   :  { %420 = vmatprep.mubr.f32.mxu1 %v698_v2 }
 0x304   :  { %v296_v34 = vpop.f32.mrb[0].mxu1 }
 0x305   :  { %v297_v36 = vadd.f32 %v296_v34, %v224_v33  ;;  %v298_v37 = vpop.f32.mrb[1].mxu1 }
 0x306   :  { %v299_v38 = vadd.f32 %v298_v37, %v224_v33 }
 0x307   :  { %v612_v39 = vmul.f32 -1.442695, %v297_v36 }
 0x308   :  { %v613_v40 = vmul.f32 -1.442695, %v299_v38 }
 0x309   :  { %670 = vpow2.f32 %v612_v39 }
 0x30a   :  { %672 = vpow2.f32 %v613_v40  ;;  %v706_v40 = vmov 7  }
 0x30b   :  { %646 = vset.pattern.permute.xlu0 %v706_v40 }
 0x313   :  { %v671_v41 = vpop.eup %670 }
 0x314   :  { %v673_v42 = vpop.eup %672  ;;  %v307_v43 = vadd.f32 1.0, %v671_v41  ;;  %v707_v41 = vmov 8  }
 0x315   :  { %v308_v44 = vadd.f32 1.0, %v673_v42 }
 0x316   :  { %674 = vrcp.f32 %v307_v43 }
 0x317   :  { %676 = vrcp.f32 %v308_v44 }
 0x320   :  { %v675_v45 = vpop.eup %674 }
 0x321   :  { %v677_v46 = vpop.eup %676  ;;  %v313_v48 = vmul.f32 %v675_v45, %v297_v36 }
 0x322   :  { %v314_v47 = vmul.f32 %v677_v46, %v299_v38 }
 0x323   :  { %v321_v52 = vmul.f32 %v313_v48, %v313_v48 }
 0x324   :  { %v316_v2 = vmul.f32 %v762_v35, %v314_v47  ;;  %v322_v49 = vmul.f32 %v314_v47, %v314_v47 }
 0x326   :  { %v317_v50 = vadd.f32 %v316_v2, %v313_v48  ;;  %v324_v51 = vmul.f32 %v762_v35, %v322_v49  ;;  %v708_v49 = vmov 9  }
 0x328   :  { %318 = vadd.xlane.f32.xlu1 %v317_v50  ;;  %v325_v53 = vadd.f32 %v324_v51, %v321_v52 }
 0x32c   :  { %326 = vadd.xlane.f32.xlu1 %v325_v53 }
 0x3b5   :  { %v319_v56 = vpop.xlane.xlu1 %318 }
 0x3b6   :  { %v320_v57 = vmul.f32 0.005, %v319_v56 }
 0x3b8   :  { %v329_v59 = vmul.f32 %v320_v57, %v320_v57  ;;  %v334_v3 = vsub.f32 %v313_v48, %v320_v57  ;;  %v335_v4 = vsub.f32 %v314_v47, %v320_v57 }
 0x3b9   :  { %v327_v58 = vpop.xlane.xlu1 %326 }
 0x3ba   :  { %v328_v60 = vmul.f32 0.005, %v327_v58  ;;  %v20_v58 = vld [vmem:[%s806_s1 + $0x20] sm:$0xff] }
 0x3bc   :  { %v330_v61 = vsub.f32 %v328_v60, %v329_v59 }
 0x3be   :  { %v331_v62 = vadd.f32 1e-05, %v330_v61 }
 0x3c0   :  { %678 = vrsqrt.f32 %v331_v62 }
 0x3ca   :  { %v679_v63 = vpop.eup %678 }
 0x3cb   :  { %v333_v0 = vmul.f32 %v679_v63, %v743_v5 }
 0x3cd   :  { %338 = vperm.xlu1 %643, %v333_v0  }
 0x3d1   :  { %647 = vset.pattern.permute.xlu1 %v707_v41 }
 0x44c   :  { %v339_v7 = vpop.permute.xlu1 %338 }
 0x44d   :  { %v341_v9 = vmul.f32 %v339_v7, %v334_v3  ;;  %v342_v10 = vmul.f32 %v339_v7, %v335_v4 }
 0x44f   :  { %v347_v11 = vadd.f32 %v345_v8, %v341_v9  ;;  %v348_v12 = vadd.f32 %v345_v8, %v342_v10  ;;  %v709_v8 = vmov 1966171168  }
 0x450   :  { %v581_v9 = vunpack.c.l.s4 %v709_v8 }
 0x451   :  { %356 = vmatprep.subr.mxu1 %v348_v12 }
 0x452   :  { %357 = vmatpush1.msra.mxu1 %v347_v11  ;;  %v582_v10 = vunpack.c.0.s8 %v581_v9  ;;  %v584_v11 = vshrl.u32 %v23_v22, 7 }
 0x453   :  { %614 = vmatmul.mubr.msk.f32.vlgmr.msra.gmra.mrb[2].mxu1 %vm42_vm0, %v19_v13 }
 0x454   :  { %v585_v13 = vsub.s32 %v582_v10, %v584_v11 }
 0x526   :  { %v422_v15 = vpop.f32.mrb[2].mxu1 }
 0x527   :  { %v423_v16 = vadd.f32 %v422_v15, %v351_v14  ;;  %v424_v17 = vpop.f32.mrb[3].mxu1 }
 0x528   :  { %v425_v18 = vadd.f32 %v424_v17, %v351_v14 }
 0x529   :  { %v615_v19 = vmul.f32 -1.442695, %v423_v16 }
 0x52a   :  { %v616_v20 = vmul.f32 -1.442695, %v425_v18 }
 0x52b   :  { %680 = vpow2.f32 %v615_v19 }
 0x52c   :  { %682 = vpow2.f32 %v616_v20 }
 0x535   :  { %v681_v21 = vpop.eup %680 }
 0x536   :  { %v683_v23 = vpop.eup %682  ;;  %v433_v24 = vadd.f32 1.0, %v681_v21 }
 0x537   :  { %v434_v25 = vadd.f32 1.0, %v683_v23 }
 0x538   :  { %684 = vrcp.f32 %v433_v24 }
 0x539   :  { %686 = vrcp.f32 %v434_v25 }
 0x542   :  { %v685_v26 = vpop.eup %684 }
 0x543   :  { %v687_v27 = vpop.eup %686  ;;  %v439_v28 = vmul.f32 %v685_v26, %v423_v16 }
 0x544   :  { %v440_v29 = vmul.f32 %v687_v27, %v425_v18 }
 0x545   :  { %v450_v30 = vmul.f32 %v439_v28, %v439_v28  ;;  %v444_v32 = vsel %vm443_vm3, %v439_v28, 0.0 }
 0x546   :  { %v442_v6 = vmul.f32 %v762_v35, %v440_v29  ;;  %v451_v31 = vmul.f32 %v440_v29, %v440_v29 }
 0x547   :  { %v454_v37 = vsel %vm443_vm3, %v450_v30, 0.0 }
 0x548   :  { %v445_v33 = vsel %vm443_vm3, %v442_v6, 0.0  ;;  %v453_v34 = vmul.f32 %v762_v35, %v451_v31 }
 0x549   :  { %v446_v36 = vadd.f32 %v445_v33, %v444_v32 }
 0x54a   :  { %v455_v38 = vsel %vm443_vm3, %v453_v34, 0.0 }
 0x54b   :  { %447 = vadd.xlane.f32.xlu1 %v446_v36  ;;  %v456_v39 = vadd.f32 %v455_v38, %v454_v37 }
 0x54d   :  { %457 = vadd.xlane.f32.xlu0 %v456_v39 }
 0x55c   :  { %475 = vperm.xlu1 %647, %v743_v5  }
 0x560   :  { %648 = vset.pattern.permute.xlu1 %v708_v49 }
 0x561   :  { %481 = vperm.xlu1 %648, %v743_v5  }
 0x5d8   :  { %v448_v42 = vpop.xlane.xlu1 %447 }
 0x5d9   :  { %v449_v43 = vmul.f32 0.005, %v448_v42 }
 0x5da   :  { %v458_v44 = vpop.xlane.xlu0 %457 }
 0x5db   :  { %v459_v45 = vmul.f32 0.005, %v458_v44  ;;  %v460_v46 = vmul.f32 %v449_v43, %v449_v43  ;;  %v465_v50 = vsub.f32 %v439_v28, %v449_v43  ;;  %v466_v51 = vsub.f32 %v440_v29, %v449_v43 }
 0x5dc   :  { %v476_v53 = vpop.permute.xlu1 %475 }
 0x5dd   :  { %v461_v35 = vsub.f32 %v459_v45, %v460_v46 }
 0x5df   :  { %v462_v47 = vadd.f32 1e-05, %v461_v35 }
 0x5e0   :  { %v482_v59 = vpop.permute.xlu1 %481 }
 0x5e1   :  { %688 = vrsqrt.f32 %v462_v47 }
 0x5eb   :  { %v689_v48 = vpop.eup %688 }
 0x5ec   :  { %v464_v2 = vmul.f32 %v689_v48, %v743_v5 }
 0x5ee   :  { %469 = vperm.xlu0 %646, %v464_v2  }
 0x5f2   :  { %649 = vset.pattern.permute.xlu0 %v708_v49 }
 0x66d   :  { %v470_v52 = vpop.permute.xlu0 %469 }
 0x66e   :  { %v472_v54 = vmul.f32 %v470_v52, %v465_v50  ;;  %v473_v55 = vmul.f32 %v470_v52, %v466_v51 }
 0x670   :  { %v478_v56 = vadd.f32 %v476_v53, %v472_v54  ;;  %v479_v57 = vadd.f32 %v476_v53, %v473_v55 }
 0x672   :  { %617 = vmatprep.subr.msk.mxu0 %vm443_vm3, %v479_v57 }
 0x673   :  { %618 = vmatpush1.msk.msra.mxu0 %vm443_vm3, %v478_v56 }
 0x674   :  { %619 = vmatmul.mubr.msk.f32.vlgmr.msra.gmra.mrb[4].mxu0 %vm484_vm4, %v20_v58 }
 0x747   :  { %v560_v5 = vpop.f32.mrb[4].mxu0 }
 0x748   :  { %v562_v60 = vpop.f32.mrb[5].mxu0  ;;  %v561_v61 = vadd.f32 %v560_v5, %v482_v59 }
 0x749   :  { %v563_v62 = vadd.f32 %v562_v60, %v482_v59 }
 0x74a   :  { %v620_v63 = vmul.f32 -1.442695, %v561_v61 }
 0x74b   :  { %v621_v0 = vmul.f32 -1.442695, %v563_v62 }
 0x74c   :  { %690 = vpow2.f32 %v620_v63 }
 0x74d   :  { %692 = vpow2.f32 %v621_v0 }
 0x756   :  { %v691_v1 = vpop.eup %690 }
 0x757   :  { %v693_v3 = vpop.eup %692  ;;  %v571_v4 = vadd.f32 1.0, %v691_v1 }
 0x758   :  { %v572_v7 = vadd.f32 1.0, %v693_v3 }
 0x759   :  { %694 = vrcp.f32 %v571_v4 }
 0x75a   :  { %696 = vrcp.f32 %v572_v7 }
 0x763   :  { %v695_v12 = vpop.eup %694 }
 0x764   :  { %v697_v14 = vpop.eup %696 }
 0x765   :  { %v579_v15 = vcombine.low %v695_v12, %v697_v14 }
 0x767   :  { %v586_v16 = vrot.slane %v579_v15, %v585_v13 }
 0x769   :  { %v593_v17 = vrot.slane %v586_v16, %v585_v13 }
 0x76b   :  { %599 = vst.msk [vmem:[%s808_s3] sm:$0x3] %vm597_vm5, %v593_v17 }

</bundles_post_ra>
